<compile_context>
chip_gen: v7x
topology: tpu7x:2x2x1
jax: 0.10.0
libtpu: 0.0.40
codegen_flags: <defaults>
</compile_context>

<pallas_src>
import jax
import jax.numpy as jnp
from jax.experimental import pallas as pl
from jax.experimental.pallas import tpu as pltpu


def _round_up(x, m):
    return ((x + m - 1) // m) * m


def _cdiv(a, b):
    return -(-a // b)


def _vmem_capacity_bytes():
    try:
        return int(pltpu.get_tpu_info().vmem_capacity_bytes)
    except Exception:
        return 64 << 20  # conservative default (v7x per-TensorCore VMEM)


def pooling_linear_kernel(x_ref, w_ref, b_ref, o_ref):
    # x_ref : (tm, K)   activation tile (native dtype)
    # w_ref : (K, tn)   folded pooling+linear weight
    # b_ref : (1, tn)   bias (f32)
    # o_ref : (tm, tn)  output tile
    acc = jnp.dot(x_ref[...], w_ref[...], preferred_element_type=jnp.float32)
    o_ref[...] = (acc + b_ref[...]).astype(o_ref.dtype)


def pooling_model_forward(data, weight, bias, pooling_size, unit_size=1.0):
    """data: (seq_len, batch, input_size) -> (seq_len, batch, output_size)."""
    seq_len, batch, input_size = data.shape
    p2 = pooling_size ** 2
    assert input_size % p2 == 0, "input_size must be divisible by pooling_size**2"
    group = input_size // p2
    output_size = weight.shape[0]

    dtype = data.dtype
    itemsize = jnp.dtype(dtype).itemsize
    pack = max(8, 32 // itemsize)  # sublane pack: 8 f32, 16 bf16, 32 int8/fp8

    # Fold average pooling into the linear weight (fold in f32, then cast):
    #   W_eff[k, n] = weight[n, k // group] / group   ->   out = x @ W_eff + b
    w_eff = (jnp.repeat(weight.T.astype(jnp.float32), group, axis=0) / group).astype(dtype)
    b2d = bias.astype(jnp.float32).reshape(1, output_size)

    # Flatten (seq_len, batch) -> rows. No padding, no post-slicing.
    m_rows = seq_len * batch
    x2d = data.reshape(m_rows, input_size)

    # Generation-aware VMEM budget.
    vmem_cap = _vmem_capacity_bytes()
    budget = max(16 << 20, int(vmem_cap * 0.6))

    # N tiling: keep the whole weight resident when it fits, else tile N in
    # 128-lane multiples (ragged last N tile is masked).
    w_bytes = input_size * output_size * itemsize
    if w_bytes <= budget // 3:
        tn = output_size
    else:
        per_col = input_size * itemsize
        tn = max(128, ((budget // 3) // per_col) // 128 * 128)
        tn = min(tn, _round_up(output_size, 128))
    n_tiles = _cdiv(output_size, tn)

    # M tiling: biggest sublane-aligned tile that fits the pipelined buffers.
    resident = input_size * tn * itemsize + tn * 4          # 1x weight + 1x bias
    per_row = 2 * (input_size + tn) * itemsize              # 2x x-tile + 2x out-tile
    cap_rows = max(pack, max(budget - resident, per_row * pack) // per_row)
    cap_rows = (cap_rows // pack) * pack
    tm = max(pack, min(2048, cap_rows, _round_up(m_rows, pack)))
    # Keep >= 2 M tiles when possible so megacore sharding (v7x) has work.
    if _cdiv(m_rows, tm) == 1 and m_rows >= 2 * pack:
        tm = _round_up(_cdiv(m_rows, 2), pack)
    m_tiles = _cdiv(m_rows, tm)

    grid = (n_tiles, m_tiles)  # N outer (weight block changes rarely), M inner

    cost = pl.CostEstimate(
        flops=2 * m_rows * input_size * output_size,
        transcendentals=0,
        bytes_accessed=(m_rows * input_size * itemsize
                        + input_size * output_size * itemsize
                        + output_size * 4
                        + m_rows * output_size * itemsize),
    )

    def _run(single_buffer_weights):
        res_kw = {"pipeline_mode": pl.Buffered(1)} if single_buffer_weights else {}
        in_specs = [
            pl.BlockSpec((tm, input_size), lambda j, i: (i, 0)),            # x tile (pipelined)
            pl.BlockSpec((input_size, tn), lambda j, i: (0, j), **res_kw),  # W_eff (resident)
            pl.BlockSpec((1, tn), lambda j, i: (0, j), **res_kw),           # bias  (resident)
        ]
        out_spec = pl.BlockSpec((tm, tn), lambda j, i: (i, j))

        w_bufs = 1 if single_buffer_weights else 2
        needed = (2 * tm * input_size * itemsize        # x (double-buffered)
                  + 2 * tm * tn * itemsize              # out (double-buffered)
                  + w_bufs * input_size * tn * itemsize
                  + w_bufs * tn * 4)
        vmem_limit = int(min(max(2 * needed, 8 << 20), int(vmem_cap * 0.75)))
        vmem_limit = int(min(max(vmem_limit, needed + (2 << 20)), vmem_cap))

        return pl.pallas_call(
            pooling_linear_kernel,
            out_shape=jax.ShapeDtypeStruct((m_rows, output_size), dtype),
            grid=grid,
            in_specs=in_specs,
            out_specs=out_spec,
            compiler_params=pltpu.CompilerParams(
                dimension_semantics=("parallel", "parallel"),
                vmem_limit_bytes=vmem_limit,
            ),
            cost_estimate=cost,
        )(x2d, w_eff, b2d)

    try:
        out2d = _run(single_buffer_weights=True)
    except Exception:
        # TODO(synk): pl.Buffered(1) (single-buffered resident weight) rejected
        # by this jax build; fall back to default double-buffering.
        out2d = _run(single_buffer_weights=False)

    return out2d.reshape(seq_len, batch, output_size)


def init_params(key, pooling_size, output_size):
    """Deterministic init mimicking nn.Linear default (uniform +-1/sqrt(fan_in))."""
    p2 = pooling_size ** 2
    kw, kb = jax.random.split(key)
    bound = 1.0 / (p2 ** 0.5)
    weight = jax.random.uniform(kw, (output_size, p2), jnp.float32, -bound, bound)
    bias = jax.random.uniform(kb, (output_size,), jnp.float32, -bound, bound)
    return weight, bias


if __name__ == "__main__":
    # Small shapes consistent with the module's forward docstring.
    seq_len, batch = 8, 2
    input_size = 64
    pooling_size = 4          # pooled features = pooling_size**2 = 16
    output_size = 32

    key = jax.random.PRNGKey(0)
    kx, kp = jax.random.split(key)
    data = jax.random.normal(kx, (seq_len, batch, input_size), jnp.float32)
    weight, bias = init_params(kp, pooling_size, output_size)

    out = pooling_model_forward(data, weight, bias, pooling_size, unit_size=1.0)
    out = jax.block_until_ready(out)

    # Pure-JAX reference check.
    p2 = pooling_size ** 2
    pooled_ref = data.reshape(seq_len, batch, p2, input_size // p2).mean(-1)
    ref = pooled_ref @ weight.T + bias
    assert out.shape == (seq_len, batch, output_size)
    assert jnp.allclose(out, ref, atol=1e-5, rtol=1e-5)

    print("KERNEL_OK")
</pallas_src>

<mosaic_0001>
module attributes {stable_mosaic.version = 11 : i64} {
  func.func @pooling_linear_kernel(%arg0: i32, %arg1: i32, %arg2: memref<8x64xf32, #tpu.memory_space<vmem>>, %arg3: memref<64x32xf32, #tpu.memory_space<vmem>>, %arg4: memref<1x32xf32, #tpu.memory_space<vmem>>, %arg5: memref<8x32xf32, #tpu.memory_space<vmem>>) attributes {dimension_semantics = [#tpu.dimension_semantics<parallel>, #tpu.dimension_semantics<parallel>], iteration_bounds = array<i64: 1, 2>, scalar_prefetch = 0 : i64, scratch_operands = 0 : i64, tpu.core_type = #tpu.core_type<tc>, window_params = [{transform_indices = @transform_0, window_bounds = array<i64: 8, 64>}, {pipeline_mode = #tpu.pipeline_mode<synchronous>, transform_indices = @transform_1, window_bounds = array<i64: 64, 32>}, {pipeline_mode = #tpu.pipeline_mode<synchronous>, transform_indices = @transform_2, window_bounds = array<i64: 1, 32>}, {transform_indices = @transform_3, window_bounds = array<i64: 8, 32>}]} {
    %c0 = arith.constant 0 : index
    %c0_0 = arith.constant 0 : index
    %0 = vector.load %arg2[%c0, %c0_0] : memref<8x64xf32, #tpu.memory_space<vmem>>, vector<8x64xf32>
    %c0_1 = arith.constant 0 : index
    %c0_2 = arith.constant 0 : index
    %1 = vector.load %arg3[%c0_1, %c0_2] : memref<64x32xf32, #tpu.memory_space<vmem>>, vector<64x32xf32>
    %cst = arith.constant dense<0.000000e+00> : vector<8x32xf32>
    %2 = tpu.matmul %0, %1, %cst {dimension_numbers = #tpu.dot_dimension_numbers<[1], [0], [0], [1], [0, 0, 1, 1], [], []>} : vector<8x64xf32>, vector<64x32xf32>, vector<8x32xf32> -> vector<8x32xf32>
    %c0_3 = arith.constant 0 : index
    %c0_4 = arith.constant 0 : index
    %3 = vector.load %arg4[%c0_3, %c0_4] : memref<1x32xf32, #tpu.memory_space<vmem>>, vector<1x32xf32>
    %4 = vector.broadcast %3 : vector<1x32xf32> to vector<8x32xf32>
    %5 = arith.addf %2, %4 : vector<8x32xf32>
    %c0_5 = arith.constant 0 : index
    %c0_6 = arith.constant 0 : index
    %6 = vector.load %arg5[%c0_5, %c0_6] : memref<8x32xf32, #tpu.memory_space<vmem>>, vector<8x32xf32>
    tpu.vector_store %arg5[%c0_5, %c0_6], %5 {strides = array<i32>} : memref<8x32xf32, #tpu.memory_space<vmem>>, vector<8x32xf32>,
    return
  }
  func.func @transform_0(%arg0: i32, %arg1: i32) -> (i32, i32) {
    %c0_i32 = arith.constant 0 : i32
    %c0_i32_0 = arith.constant 0 : i32
    return %arg1, %c0_i32 : i32, i32
  }
  func.func @transform_1(%arg0: i32, %arg1: i32) -> (i32, i32) {
    %c0_i32 = arith.constant 0 : i32
    %c0_i32_0 = arith.constant 0 : i32
    return %c0_i32, %arg0 : i32, i32
  }
  func.func @transform_2(%arg0: i32, %arg1: i32) -> (i32, i32) {
    %c0_i32 = arith.constant 0 : i32
    %c0_i32_0 = arith.constant 0 : i32
    return %c0_i32, %arg0 : i32, i32
  }
  func.func @transform_3(%arg0: i32, %arg1: i32) -> (i32, i32) {
    %c0_i32 = arith.constant 0 : i32
    return %arg1, %arg0 : i32, i32
  }
}

module attributes {stable_mosaic.version = 11 : i64} {
  func.func @pooling_linear_kernel(%arg0: i32, %arg1: i32, %arg2: memref<8x64xf32, #tpu.memory_space<vmem>>, %arg3: memref<64x32xf32, #tpu.memory_space<vmem>>, %arg4: memref<1x32xf32, #tpu.memory_space<vmem>>, %arg5: memref<8x32xf32, #tpu.memory_space<vmem>>) attributes {dimension_semantics = [#tpu.dimension_semantics<parallel>, #tpu.dimension_semantics<parallel>], iteration_bounds = array<i64: 1, 2>, scalar_prefetch = 0 : i64, scratch_operands = 0 : i64, tpu.core_type = #tpu.core_type<tc>, window_params = [{transform_indices = @transform_0, window_bounds = array<i64: 8, 64>}, {transform_indices = @transform_1, window_bounds = array<i64: 64, 32>}, {transform_indices = @transform_2, window_bounds = array<i64: 1, 32>}, {transform_indices = @transform_3, window_bounds = array<i64: 8, 32>}]} {
    %c0 = arith.constant 0 : index
    %c0_0 = arith.constant 0 : index
    %0 = vector.load %arg2[%c0, %c0_0] : memref<8x64xf32, #tpu.memory_space<vmem>>, vector<8x64xf32>
    %c0_1 = arith.constant 0 : index
    %c0_2 = arith.constant 0 : index
    %1 = vector.load %arg3[%c0_1, %c0_2] : memref<64x32xf32, #tpu.memory_space<vmem>>, vector<64x32xf32>
    %cst = arith.constant dense<0.000000e+00> : vector<8x32xf32>
    %2 = tpu.matmul %0, %1, %cst {dimension_numbers = #tpu.dot_dimension_numbers<[1], [0], [0], [1], [0, 0, 1, 1], [], []>} : vector<8x64xf32>, vector<64x32xf32>, vector<8x32xf32> -> vector<8x32xf32>
    %c0_3 = arith.constant 0 : index
    %c0_4 = arith.constant 0 : index
    %3 = vector.load %arg4[%c0_3, %c0_4] : memref<1x32xf32, #tpu.memory_space<vmem>>, vector<1x32xf32>
    %4 = vector.broadcast %3 : vector<1x32xf32> to vector<8x32xf32>
    %5 = arith.addf %2, %4 : vector<8x32xf32>
    %c0_5 = arith.constant 0 : index
    %c0_6 = arith.constant 0 : index
    %6 = vector.load %arg5[%c0_5, %c0_6] : memref<8x32xf32, #tpu.memory_space<vmem>>, vector<8x32xf32>
    tpu.vector_store %arg5[%c0_5, %c0_6], %5 {strides = array<i32>} : memref<8x32xf32, #tpu.memory_space<vmem>>, vector<8x32xf32>,
    return
  }
  func.func @transform_0(%arg0: i32, %arg1: i32) -> (i32, i32) {
    %c0_i32 = arith.constant 0 : i32
    %c0_i32_0 = arith.constant 0 : i32
    return %arg1, %c0_i32 : i32, i32
  }
  func.func @transform_1(%arg0: i32, %arg1: i32) -> (i32, i32) {
    %c0_i32 = arith.constant 0 : i32
    %c0_i32_0 = arith.constant 0 : i32
    return %c0_i32, %arg0 : i32, i32
  }
  func.func @transform_2(%arg0: i32, %arg1: i32) -> (i32, i32) {
    %c0_i32 = arith.constant 0 : i32
    %c0_i32_0 = arith.constant 0 : i32
    return %c0_i32, %arg0 : i32, i32
  }
  func.func @transform_3(%arg0: i32, %arg1: i32) -> (i32, i32) {
    %c0_i32 = arith.constant 0 : i32
    return %arg1, %arg0 : i32, i32
  }
}

</mosaic_0001>

<bundles_post_ra>
// kernel: tpu_custom_call.1
= control target key start
LH: loop header
LB: loop body
LE: loop exit
PB: predicated region body
PF: predicated region fallthrough
CT: control target
= control target key end

     0   :  { %8 = vsyncpa [#allocation3], 0  ;;  %s769_s0 = inlined_call_operand.vmem [shape: f32[16,64], index: 0, kind: input, shape index: {}]   ;;  %s770_s1 = inlined_call_operand.vmem [shape: f32[64,32], index: 1, kind: input, shape index: {}]   ;;  %s771_s2 = inlined_call_operand.vmem [shape: f32[1,32], index: 2, kind: input, shape index: {}]   ;;  %s772_s3 = inlined_call_operand.hbm [shape: f32[16,32], index: 3, kind: output, shape index: {}]  }
   0x1   :  { %10 = vsyncpa [#allocation3 + $0x1], 0  ;;  %s630_s12 = smov 0   ;;  %s632_s13 = smov 0  }
   0x2   :  { %s634_s14 = smov 0   ;;  %s636_s15 = smov 0  }
   0x3   :  { %s638_s16 = smov 0   ;;  %s640_s17 = smov 0  }
   0x4 LB: > { %s413_s18 = sadd.s32 4294967295, %s604_s17   ;;  %s414_s19 = sadd.s32 4294967294, %s604_s17   ;;  %s604_s17 = sphi %s640_s17, %s16_s17   ;;  %s600_s16 = sphi %s638_s16, %s779_s16   ;;  %s596_s15 = sphi %s636_s15, %s778_s15   ;;  %s592_s14 = sphi %s634_s14, %s777_s14   ;;  %s588_s13 = sphi %s632_s13, %s776_s13   ;;  %s584_s12 = sphi %s630_s12, %s775_s12  }
   0x5   : > { %s25_s20 = sadd.s32 1, %s600_s16  ;;  %s115_s21 = sadd.s32 1, %s592_s14 }
   0x6   : > { %p26_p0 = scmp.ge.s32.totalorder %s25_s20, 2  ;;  %p125_p1 = scmp.ne.s32.totalorder %s592_s14, %s588_s13 }
   0x7   : > { %p126_p2 = scmp.eq.s32.totalorder %s413_s18, 1  ;;  %p131_p3 = scmp.ne.s32.totalorder %s588_s13, %s584_s12 }
   0x8   : > { %s781_s20 = smov (%p26_p0, %s25_s20), 0  ;;  %p132_p5 = scmp.eq.s32.totalorder %s414_s19, 1 }
   0x9   : > { %p670_p4 = por %p126_p2, %p125_p1  ;;  %s110_s23 = ssub.s32 %s600_s16, %s781_s20 }
   0xa   : > { %p419_p6 = scmp.ge.s32.totalorder %s604_s17, 1  ;;  %p113_p7 = scmp.eq.s32.totalorder %s110_s23, 0 }
   0xb   : > { %p677_p8 = por %p132_p5, %p131_p3  ;;  %p170_p9 = scmp.lt.s32.totalorder %s604_s17, 3 }
   0xc   : > { %s683_s25 = scalar_select %p113_p7, %s592_s14, %s115_s21  }
   0xd   : > { %p171_p10 = pnand %p419_p6, %p170_p9 }
   0xe   : > { %v212_v0 = vld [vmem:[%s770_s1] sm:$0xff] (!%p171_p10)  ;;  %v213_v1 = vld [vmem:[%s770_s1 + $0x8] sm:$0xff] (!%p171_p10)  ;;  %v214_v2 = vld [vmem:[%s770_s1 + $0x10] sm:$0xff] (!%p171_p10)  ;;  %v606_v3 = vmov (!%p171_p10), 0.0|0.0   ;;  %vm607_vm0 = vmmov (!%p171_p10), 0   ;;  %v608_v6 = vmov (!%p171_p10), 0.0  }
   0xf   : > { %174 = sbr.rel (%p171_p10) target bundleno = 260 (0x104), region = 32  ;;  %456 = vmatprep.subr.bf16.mxu0 (!%p171_p10), %v606_v3  ;;  %v457_v4 = vpack.c.bf16 (!%p171_p10), %v213_v1, %v212_v0  ;;  %v215_v5 = vld [vmem:[%s770_s1 + $0x18] sm:$0xff] (!%p171_p10)  ;;  %453 = vmatprep.mubr.msk.f32.mxu0 (!%p171_p10), %vm607_vm0, %v608_v6  ;;  %p200_p11 = scmp.lt.s32.totalorder (!%p171_p10), %s596_s15, 1  ;;  %v216_v8 = vld [vmem:[%s770_s1 + $0x20] sm:$0xff] (!%p171_p10)  ;;  %v217_v9 = vld [vmem:[%s770_s1 + $0x28] sm:$0xff] (!%p171_p10)  ;;  %vm227_vm1 = vcmask (!%p171_p10), 523264  }
  0x10   : > { %v460_v7 = vpack.c.bf16 (!%p171_p10), %v215_v5, %v214_v2  ;;  %v463_v10 = vpack.c.bf16 (!%p171_p10), %v217_v9, %v216_v8  ;;  %v218_v11 = vld [vmem:[%s770_s1 + $0x30] sm:$0xff] (!%p171_p10)  ;;  %v219_v12 = vld [vmem:[%s770_s1 + $0x38] sm:$0xff] (!%p171_p10)  ;;  %s197_s30 = sand.u32 (!%p171_p10), 1, %s588_s13   ;;  %v422_v15 = vld [vmem:[%s771_s2] ss:$0 sm:$0xff] (!%p171_p10)  ;;  %s425_s7 = sshll.u32 (!%p171_p10), %s596_s15, 7 }
  0x11   : > { %458 = vmatpush3.bf16.msra.mxu0 (!%p171_p10), %v457_v4  ;;  %v466_v13 = vpack.c.bf16 (!%p171_p10), %v219_v12, %v218_v11  ;;  %s420_s4 = sshll.u32 (!%p171_p10), %s197_s30, 3  ;;  %vm301_vm2 = vcmask (!%p171_p10), 261120   ;;  %s722_s18 = scalar_lea.hbm (!%p171_p10), %s772_s3, %s425_s7 }
  0x12   : > { %459 = vmatprep.subr.bf16.mxu0 (!%p171_p10), %v606_v3  ;;  %s199_s8 = scalar_lea.vmem (!%p171_p10), [#allocation2], %s420_s4  ;;  %s304_s19 = scalar_lea.sflag (!%p171_p10), [#allocation3], %s197_s30 }
  0x13   : > { %s318_s9 = sshll.u32 (!%p171_p10), %s199_s8, 4  ;;  %s724_s9 = int_to_ptr.vmem [resolvable:$true] %s318_s9 }
  0x14   : > { %s526_s21 = scalar_lea.vmem (!%p171_p10), %s724_s9, 128 }
  0x15   : > { %461 = vmatpush3.bf16.msra.mxu0 (!%p171_p10), %v460_v7  ;;  %p527_p12 = scmp.ne.s32.totalorder (!%p171_p10), %s724_s9, %s526_s21 }
  0x16   : > { %s201_s11 = scalar_select %p200_p11, %s596_s15, 1  ;;  %462 = vmatprep.subr.bf16.mxu0 %v606_v3 }
  0x17   : > { %p528_p13 = pnand %p527_p12, %p670_p4  ;;  %s609_s15 = smov [#allocation2]  }
  0x18   : > { %s421_s26 = sshll.u32 %s201_s11, 3  ;;  %s530_s23 = sshll.u32 %s609_s15, 4  ;;  %s531_s23 = int_to_ptr.vmem [resolvable:$false] %s530_s23 }
  0x19   : > { %464 = vmatpush3.bf16.msra.mxu0 %v463_v10  ;;  %s203_s29 = scalar_lea.vmem %s769_s0, %s421_s26  ;;  %p529_p0 = pneg %p528_p13 }
  0x1a   : > { %465 = vmatprep.subr.bf16.mxu0 %v606_v3  ;;  %v211_v14 = vld [vmem:[%s203_s29] sm:$0xff]  ;;  %s532_s26 = scalar_lea.vmem %s531_s23, 256  ;;  %p533_p1 = scmp.lt.s32.totalorder %s724_s9, %s531_s23 }
  0x1b   : > { %p534_p2 = scmp.lt.s32.totalorder %s532_s26, %s526_s21 }
  0x1d   : > { %467 = vmatpush3.bf16.msra.mxu0 %v466_v13  ;;  %p535_p3 = por %p534_p2, %p533_p1 }
  0x1f   : > { %p536_p5 = pnand %p535_p3, %p529_p0 }
  0x20   : > { %454 = vmatmul.mubr.msk.f32.vlgmr.msra.gmra.mrb[0].mxu0 %vm227_vm1, %v211_v14 }
  0xf3   : > { %v297_v16 = vpop.f32.mrb[0].mxu0 }
  0xf4   : > { %v298_v17 = vadd.f32 %v422_v15, %v297_v16  ;;  %v455_v18 = vpop.f32.mrb[1].mxu0 }
  0xf6   : > { %302 = vst.msk [vmem:[%s199_s8] sm:$0xff] %vm301_vm2, %v298_v17 }
  0xf7   : > { %539 = shalt.err (!%p536_p5)
}
  0xf8   : > { %s540_s27 = scalar_lea.hbm %s722_s18, 128  ;;  %s544_s30 = scalar_lea.hbm %s772_s3, 256 }
  0xf9   : > { %p541_p6 = scmp.ne.s32.totalorder %s722_s18, %s540_s27  ;;  %p545_p10 = scmp.lt.u32.totalorder %s722_s18, %s772_s3 }
  0xfa   : > { %p546_p11 = scmp.lt.u32.totalorder %s544_s30, %s540_s27  ;;  %p548_p13 = scmp.lt.u32.totalorder %s540_s27, %s722_s18 }
  0xfb   : > { %p542_p7 = pnand %p541_p6, %p670_p4 }
  0xfc   : > { %p547_p12 = por %p546_p11, %p545_p10 }
  0xfd   : > { %p543_p9 = pneg %p542_p7 }
  0xfe   : > { %p549_p0 = por %p548_p13, %p547_p12 }
 0x100   : > { %p550_p1 = pnand %p549_p0, %p543_p9 }
 0x102   : > { %553 = shalt.err (!%p550_p1)
}
 0x103   : > { %468 = dma.vmem_to_hbm [thread:$0]  (%p670_p4), %s724_s9, 128, %s722_s18, %s304_s19  }
 0x104 PF: > { %p474_p2 = scmp.ge.s32.totalorder %s604_s17, 2  ;;  %s330_s6 = sand.u32 1, %s584_s12  }
 0x105   : > { %s331_s7 = scalar_lea.sflag [#allocation3], %s330_s6 }
 0x106   : > { %p471_p3 = pnand %p474_p2, %p677_p8 }
 0x108   : > { %579 = dma.done.wait (!%p471_p3), %s331_s7, 128  }
 0x109   : > { %581 = vsyncadd (!%p471_p3), %s331_s7, 4294967168  ;;  %s16_s17 = sadd.s32 1, %s604_s17   ;;  %s775_s12 = smov %s588_s13 }
 0x10a   : > { %p13_p5 = scmp.ge.s32.totalorder %s16_s17, 4   ;;  %s776_s13 = smov %s592_s14 }
 0x10b   : > { %s777_s14 = smov %s683_s25  ;;  %s778_s15 = smov %s600_s16 }
 0x10c   : > { %s779_s16 = smov %s781_s20  ;;  %15 = sbr.rel (!%p13_p5) target bundleno = 4 (0x4), region = 73 }
 0x113   :  { %336 = vsyncpa [#allocation3], 1 }
 0x114   :  { %338 = vsyncpa [#allocation3 + $0x1], 1 }

// kernel: tpu_custom_call.1
= control target key start
LH: loop header
LB: loop body
LE: loop exit
PB: predicated region body
PF: predicated region fallthrough
CT: control target
= control target key end

     0   :  { %8 = vsyncpa [#allocation3], 0  ;;  %s769_s0 = inlined_call_operand.vmem [shape: f32[16,64], index: 0, kind: input, shape index: {}]   ;;  %s770_s1 = inlined_call_operand.vmem [shape: f32[64,32], index: 1, kind: input, shape index: {}]   ;;  %s771_s2 = inlined_call_operand.vmem [shape: f32[1,32], index: 2, kind: input, shape index: {}]   ;;  %s772_s3 = inlined_call_operand.hbm [shape: f32[16,32], index: 3, kind: output, shape index: {}]  }
   0x1   :  { %10 = vsyncpa [#allocation3 + $0x1], 0  ;;  %s630_s12 = smov 0   ;;  %s632_s13 = smov 0  }
   0x2   :  { %s634_s14 = smov 0   ;;  %s636_s15 = smov 0  }
   0x3   :  { %s638_s16 = smov 0   ;;  %s640_s17 = smov 0  }
   0x4 LB: > { %s413_s18 = sadd.s32 4294967295, %s604_s17   ;;  %s414_s19 = sadd.s32 4294967294, %s604_s17   ;;  %s604_s17 = sphi %s640_s17, %s16_s17   ;;  %s600_s16 = sphi %s638_s16, %s779_s16   ;;  %s596_s15 = sphi %s636_s15, %s778_s15   ;;  %s592_s14 = sphi %s634_s14, %s777_s14   ;;  %s588_s13 = sphi %s632_s13, %s776_s13   ;;  %s584_s12 = sphi %s630_s12, %s775_s12  }
   0x5   : > { %s25_s20 = sadd.s32 1, %s600_s16  ;;  %s115_s21 = sadd.s32 1, %s592_s14 }
   0x6   : > { %p26_p0 = scmp.ge.s32.totalorder %s25_s20, 2  ;;  %p125_p1 = scmp.ne.s32.totalorder %s592_s14, %s588_s13 }
   0x7   : > { %p126_p2 = scmp.eq.s32.totalorder %s413_s18, 1  ;;  %p131_p3 = scmp.ne.s32.totalorder %s588_s13, %s584_s12 }
   0x8   : > { %s781_s20 = smov (%p26_p0, %s25_s20), 0  ;;  %p132_p5 = scmp.eq.s32.totalorder %s414_s19, 1 }
   0x9   : > { %p670_p4 = por %p126_p2, %p125_p1  ;;  %s110_s23 = ssub.s32 %s600_s16, %s781_s20 }
   0xa   : > { %p419_p6 = scmp.ge.s32.totalorder %s604_s17, 1  ;;  %p113_p7 = scmp.eq.s32.totalorder %s110_s23, 0 }
   0xb   : > { %p677_p8 = por %p132_p5, %p131_p3  ;;  %p170_p9 = scmp.lt.s32.totalorder %s604_s17, 3 }
   0xc   : > { %s683_s25 = scalar_select %p113_p7, %s592_s14, %s115_s21  }
   0xd   : > { %p171_p10 = pnand %p419_p6, %p170_p9 }
   0xe   : > { %v212_v0 = vld [vmem:[%s770_s1] sm:$0xff] (!%p171_p10)  ;;  %v213_v1 = vld [vmem:[%s770_s1 + $0x8] sm:$0xff] (!%p171_p10)  ;;  %v214_v2 = vld [vmem:[%s770_s1 + $0x10] sm:$0xff] (!%p171_p10)  ;;  %v606_v3 = vmov (!%p171_p10), 0.0|0.0   ;;  %vm607_vm0 = vmmov (!%p171_p10), 0   ;;  %v608_v6 = vmov (!%p171_p10), 0.0  }
   0xf   : > { %174 = sbr.rel (%p171_p10) target bundleno = 260 (0x104), region = 32  ;;  %456 = vmatprep.subr.bf16.mxu0 (!%p171_p10), %v606_v3  ;;  %v457_v4 = vpack.c.bf16 (!%p171_p10), %v213_v1, %v212_v0  ;;  %v215_v5 = vld [vmem:[%s770_s1 + $0x18] sm:$0xff] (!%p171_p10)  ;;  %453 = vmatprep.mubr.msk.f32.mxu0 (!%p171_p10), %vm607_vm0, %v608_v6  ;;  %p200_p11 = scmp.lt.s32.totalorder (!%p171_p10), %s596_s15, 1  ;;  %v216_v8 = vld [vmem:[%s770_s1 + $0x20] sm:$0xff] (!%p171_p10)  ;;  %v217_v9 = vld [vmem:[%s770_s1 + $0x28] sm:$0xff] (!%p171_p10)  ;;  %vm227_vm1 = vcmask (!%p171_p10), 523264  }
  0x10   : > { %v460_v7 = vpack.c.bf16 (!%p171_p10), %v215_v5, %v214_v2  ;;  %v463_v10 = vpack.c.bf16 (!%p171_p10), %v217_v9, %v216_v8  ;;  %v218_v11 = vld [vmem:[%s770_s1 + $0x30] sm:$0xff] (!%p171_p10)  ;;  %v219_v12 = vld [vmem:[%s770_s1 + $0x38] sm:$0xff] (!%p171_p10)  ;;  %s197_s30 = sand.u32 (!%p171_p10), 1, %s588_s13   ;;  %v422_v15 = vld [vmem:[%s771_s2] ss:$0 sm:$0xff] (!%p171_p10)  ;;  %s425_s7 = sshll.u32 (!%p171_p10), %s596_s15, 7 }
  0x11   : > { %458 = vmatpush3.bf16.msra.mxu0 (!%p171_p10), %v457_v4  ;;  %v466_v13 = vpack.c.bf16 (!%p171_p10), %v219_v12, %v218_v11  ;;  %s420_s4 = sshll.u32 (!%p171_p10), %s197_s30, 3  ;;  %vm301_vm2 = vcmask (!%p171_p10), 261120   ;;  %s722_s18 = scalar_lea.hbm (!%p171_p10), %s772_s3, %s425_s7 }
  0x12   : > { %459 = vmatprep.subr.bf16.mxu0 (!%p171_p10), %v606_v3  ;;  %s199_s8 = scalar_lea.vmem (!%p171_p10), [#allocation2], %s420_s4  ;;  %s304_s19 = scalar_lea.sflag (!%p171_p10), [#allocation3], %s197_s30 }
  0x13   : > { %s318_s9 = sshll.u32 (!%p171_p10), %s199_s8, 4  ;;  %s724_s9 = int_to_ptr.vmem [resolvable:$true] %s318_s9 }
  0x14   : > { %s526_s21 = scalar_lea.vmem (!%p171_p10), %s724_s9, 128 }
  0x15   : > { %461 = vmatpush3.bf16.msra.mxu0 (!%p171_p10), %v460_v7  ;;  %p527_p12 = scmp.ne.s32.totalorder (!%p171_p10), %s724_s9, %s526_s21 }
  0x16   : > { %s201_s11 = scalar_select %p200_p11, %s596_s15, 1  ;;  %462 = vmatprep.subr.bf16.mxu0 %v606_v3 }
  0x17   : > { %p528_p13 = pnand %p527_p12, %p670_p4  ;;  %s609_s15 = smov [#allocation2]  }
  0x18   : > { %s421_s26 = sshll.u32 %s201_s11, 3  ;;  %s530_s23 = sshll.u32 %s609_s15, 4  ;;  %s531_s23 = int_to_ptr.vmem [resolvable:$false] %s530_s23 }
  0x19   : > { %464 = vmatpush3.bf16.msra.mxu0 %v463_v10  ;;  %s203_s29 = scalar_lea.vmem %s769_s0, %s421_s26  ;;  %p529_p0 = pneg %p528_p13 }
  0x1a   : > { %465 = vmatprep.subr.bf16.mxu0 %v606_v3  ;;  %v211_v14 = vld [vmem:[%s203_s29] sm:$0xff]  ;;  %s532_s26 = scalar_lea.vmem %s531_s23, 256  ;;  %p533_p1 = scmp.lt.s32.totalorder %s724_s9, %s531_s23 }
  0x1b   : > { %p534_p2 = scmp.lt.s32.totalorder %s532_s26, %s526_s21 }
  0x1d   : > { %467 = vmatpush3.bf16.msra.mxu0 %v466_v13  ;;  %p535_p3 = por %p534_p2, %p533_p1 }
  0x1f   : > { %p536_p5 = pnand %p535_p3, %p529_p0 }
  0x20   : > { %454 = vmatmul.mubr.msk.f32.vlgmr.msra.gmra.mrb[0].mxu0 %vm227_vm1, %v211_v14 }
  0xf3   : > { %v297_v16 = vpop.f32.mrb[0].mxu0 }
  0xf4   : > { %v298_v17 = vadd.f32 %v422_v15, %v297_v16  ;;  %v455_v18 = vpop.f32.mrb[1].mxu0 }
  0xf6   : > { %302 = vst.msk [vmem:[%s199_s8] sm:$0xff] %vm301_vm2, %v298_v17 }
  0xf7   : > { %539 = shalt.err (!%p536_p5)
}
  0xf8   : > { %s540_s27 = scalar_lea.hbm %s722_s18, 128  ;;  %s544_s30 = scalar_lea.hbm %s772_s3, 256 }
  0xf9   : > { %p541_p6 = scmp.ne.s32.totalorder %s722_s18, %s540_s27  ;;  %p545_p10 = scmp.lt.u32.totalorder %s722_s18, %s772_s3 }
  0xfa   : > { %p546_p11 = scmp.lt.u32.totalorder %s544_s30, %s540_s27  ;;  %p548_p13 = scmp.lt.u32.totalorder %s540_s27, %s722_s18 }
  0xfb   : > { %p542_p7 = pnand %p541_p6, %p670_p4 }
  0xfc   : > { %p547_p12 = por %p546_p11, %p545_p10 }
  0xfd   : > { %p543_p9 = pneg %p542_p7 }
  0xfe   : > { %p549_p0 = por %p548_p13, %p547_p12 }
 0x100   : > { %p550_p1 = pnand %p549_p0, %p543_p9 }
 0x102   : > { %553 = shalt.err (!%p550_p1)
}
 0x103   : > { %468 = dma.vmem_to_hbm [thread:$0]  (%p670_p4), %s724_s9, 128, %s722_s18, %s304_s19  }
 0x104 PF: > { %p474_p2 = scmp.ge.s32.totalorder %s604_s17, 2  ;;  %s330_s6 = sand.u32 1, %s584_s12  }
 0x105   : > { %s331_s7 = scalar_lea.sflag [#allocation3], %s330_s6 }
 0x106   : > { %p471_p3 = pnand %p474_p2, %p677_p8 }
 0x108   : > { %579 = dma.done.wait (!%p471_p3), %s331_s7, 128  }
 0x109   : > { %581 = vsyncadd (!%p471_p3), %s331_s7, 4294967168  ;;  %s16_s17 = sadd.s32 1, %s604_s17   ;;  %s775_s12 = smov %s588_s13 }
 0x10a   : > { %p13_p5 = scmp.ge.s32.totalorder %s16_s17, 4   ;;  %s776_s13 = smov %s592_s14 }
 0x10b   : > { %s777_s14 = smov %s683_s25  ;;  %s778_s15 = smov %s600_s16 }
 0x10c   : > { %s779_s16 = smov %s781_s20  ;;  %15 = sbr.rel (!%p13_p5) target bundleno = 4 (0x4), region = 73 }
 0x113   :  { %336 = vsyncpa [#allocation3], 1 }
 0x114   :  { %338 = vsyncpa [#allocation3 + $0x1], 1 }

</bundles_post_ra>
